<compile_context>
chip_gen: v7x
topology: tpu7x:2x2x1
jax: 0.10.0
libtpu: 0.0.40
codegen_flags: <defaults>
</compile_context>

<pallas_src>
import jax
import jax.numpy as jnp
from jax.experimental import pallas as pl
from jax.experimental.pallas import tpu as pltpu  # noqa: F401  (TPU backend import)


# ----------------------------------------------------------------------------
# Pallas kernel: intentionally empty — output is aliased to the input.
# ----------------------------------------------------------------------------
def _identity_kernel(x_ref, o_ref):
    # Output buffer is the input buffer (input_output_aliases={0: 0}); there is
    # nothing to move or compute, so the body is deliberately empty.
    pass


def pallas_identity(x: jax.Array) -> jax.Array:
    """Identity via a zero-copy (aliased) Pallas TPU call.

    Preserves shape and dtype exactly; generates no block DMA, no VMEM usage,
    and no grid iterations.
    """
    if x.size == 0:
        # Nothing to do for empty arrays; keep semantics (return unchanged).
        return x

    return pl.pallas_call(
        _identity_kernel,
        out_shape=jax.ShapeDtypeStruct(x.shape, x.dtype),
        in_specs=[pl.BlockSpec(memory_space=pl.ANY)],   # raw HBM ref, no auto-DMA
        out_specs=pl.BlockSpec(memory_space=pl.ANY),    # raw HBM ref, no auto-DMA
        input_output_aliases={0: 0},                    # output buffer == input buffer
    )(x)


# ----------------------------------------------------------------------------
# Module-level forward matching torch IdentityModule.forward(*args)
# ----------------------------------------------------------------------------
def identity_module_forward(*args):
    """Mirrors IdentityModule.forward: returns args[0] (through the aliased
    Pallas call when it is an array) or None when called with no args."""
    if len(args) == 0:
        return None
    first = args[0]
    if isinstance(first, (jax.Array, jnp.ndarray)):
        return pallas_identity(first)
    # Non-array first arguments (python objects) pass through unchanged,
    # exactly like the torch module.
    return first


# ----------------------------------------------------------------------------
if __name__ == "__main__":
    key = jax.random.PRNGKey(0)

    # Small shape consistent with how the module is used inside ControlNeXt
    # (it stands in for a conv block on NCHW activations).
    N, C, H, W = 2, 4, 16, 16
    x = jax.random.normal(key, (N, C, H, W), jnp.float32)

    fwd = jax.jit(pallas_identity)
    y = fwd(x)
    jax.block_until_ready(y)

    # Semantics checks: exact identity, shape/dtype preserved, extra args
    # ignored, zero-arg call returns None.
    assert y.shape == x.shape and y.dtype == x.dtype
    assert bool(jnp.all(y == x))

    y2 = identity_module_forward(x, "ignored_extra_arg", 123)
    jax.block_until_ready(y2)
    assert bool(jnp.all(y2 == x))

    assert identity_module_forward() is None

    # Ragged / non-(8,128)-aligned shape: handled with zero work (no padding,
    # no extra HBM passes) because nothing is tiled.
    x_odd = jax.random.normal(jax.random.PRNGKey(1), (3, 5, 7), jnp.float32)
    y_odd = pallas_identity(x_odd)
    jax.block_until_ready(y_odd)
    assert y_odd.shape == x_odd.shape and y_odd.dtype == x_odd.dtype
    assert bool(jnp.all(y_odd == x_odd))

    # Different dtype (bf16) just to exercise dtype preservation.
    x_bf16 = jax.random.normal(jax.random.PRNGKey(2), (2, 8, 32), jnp.bfloat16)
    y_bf16 = jax.jit(pallas_identity)(x_bf16)
    jax.block_until_ready(y_bf16)
    assert y_bf16.dtype == jnp.bfloat16 and bool(jnp.all(y_bf16 == x_bf16))

    print("KERNEL_OK")
</pallas_src>

<mosaic_0001>
module attributes {stable_mosaic.version = 11 : i64} {
  func.func @_identity_kernel(%arg0: memref<2x4x16x16xf32, #tpu.memory_space<any>>, %arg1: memref<2x4x16x16xf32, #tpu.memory_space<any>>) attributes {dimension_semantics = [], scalar_prefetch = 0 : i64, scratch_operands = 0 : i64, tpu.core_type = #tpu.core_type<tc>} {
    return
  }
}

</mosaic_0001>

<bundles_post_ra>
// kernel: pallas_identity.1
= control target key start
LH: loop header
LB: loop body
LE: loop exit
PB: predicated region body
PF: predicated region fallthrough
CT: control target
= control target key end

     0   :  { %s16_s0 = inlined_call_operand.hbm [shape: f32[2,4,16,16], index: 0, kind: input, shape index: {}, may-alias: {0,1}]   ;;  %s17_s1 = inlined_call_operand.hbm [shape: f32[2,4,16,16], index: 1, kind: output, shape index: {}, may-alias: {0,1}]  }

</bundles_post_ra>
